<compile_context>
chip_gen: v6e
topology: v6e:2x2x1
jax: 0.10.0
libtpu: 0.0.40
codegen_flags: <defaults>
</compile_context>

<pallas_src>
import functools
import math

import jax
import jax.numpy as jnp
from jax.experimental import pallas as pl
from jax.experimental.pallas import tpu as pltpu

LANE = 128
SUBLANE = 8
CHUNK = 64   # rows per in-kernel streaming step; multiple of the 8/16/32 sublane tiles


def _round_up(x, m):
    return ((x + m - 1) // m) * m


def _is_v7():
    try:
        return "v7" in jax.devices()[0].device_kind.lower()
    except Exception:
        return False


def _block_accumulate(o0_ref, o1_ref, t_ref, out_ref, *, coef, rows, br, chunk,
                      blk, mask_rows):
    """Stream one (br, LANE) block through (chunk, LANE) pieces and accumulate."""
    nchunks = br // chunk

    def body(i, acc):
        r0 = pl.multiple_of(i * chunk, chunk)
        o0 = o0_ref[pl.ds(r0, chunk), :].astype(jnp.float32)
        o1 = o1_ref[pl.ds(r0, chunk), :].astype(jnp.float32)
        t = t_ref[pl.ds(r0, chunk), :].astype(jnp.float32)
        mean_err = (o0 + o1) * 0.5 - t
        asym = o0 - o1
        d = mean_err * mean_err + jnp.float32(coef) * (asym * asym)
        if mask_rows:
            # Row-granular mask (chunk, 1), broadcast over lanes: zero rows past
            # the logical end of the flattened array (partial / padded block).
            row = blk * br + r0 + jax.lax.broadcasted_iota(jnp.int32, (chunk, 1), 0)
            d = jnp.where(row < rows, d, jnp.float32(0.0))
        return acc + d

    acc = jax.lax.fori_loop(0, nchunks, body,
                            jnp.zeros((chunk, LANE), jnp.float32),
                            unroll=(nchunks <= 8))
    # Fold (chunk, 128) to the (8, 128) vreg-shaped resident accumulator with
    # pure VPU vreg adds; the single cross-lane reduce happens in the wrapper.
    out_ref[...] += acc.reshape(-1, SUBLANE, LANE).sum(axis=0)


def _mse_zsym_kernel(o0_ref, o1_ref, t_ref, out_ref, *, coef, rows, br, chunk,
                     blocks_per_core, num_blocks, last_partial, has_oob):
    c = pl.program_id(0)   # core-split index ("parallel")
    j = pl.program_id(1)   # reduction step within this core ("arbitrary")

    # Output block is resident across the j axis: zero it on the first step.
    @pl.when(j == 0)
    def _():
        out_ref[...] = jnp.zeros_like(out_ref)

    blk = c * blocks_per_core + j   # logical (unclamped) block index

    def run(mask_rows):
        _block_accumulate(o0_ref, o1_ref, t_ref, out_ref, coef=coef, rows=rows,
                          br=br, chunk=chunk, blk=blk, mask_rows=mask_rows)

    if not (last_partial or has_oob):
        run(False)                       # fast path: every block is full
    else:
        @pl.when(blk < num_blocks - 1)   # interior blocks: no mask work
        def _():
            run(False)

        @pl.when(blk == num_blocks - 1)  # final block: mask only if partial
        def _():
            run(bool(last_partial))
        # blk > num_blocks - 1: clamped duplicate block, skip compute entirely.


def _mse_zsym_jnp(o0, o1, t, coef):
    o0 = o0.astype(jnp.float32)
    o1 = o1.astype(jnp.float32)
    t = t.astype(jnp.float32)
    d = ((o0 + o1) * 0.5 - t) ** 2 + jnp.float32(coef) * (o0 - o1) ** 2
    return jnp.mean(d)


def mse_loss_zsym(output, target, coef=1.0, *, block_rows=None,
                  min_pallas_elems=1 << 18):
    """output: (2, ...) array; target broadcastable against output[0]."""
    o0, o1 = output[0], output[1]
    shape = jnp.broadcast_shapes(o0.shape, target.shape)
    # TODO(synk): when `target` (or o0/o1) is genuinely broadcast and small, keep it
    # resident in VMEM/SMEM instead of materializing a full-size HBM copy.
    if o0.shape != shape:
        o0 = jnp.broadcast_to(o0, shape)
    if o1.shape != shape:
        o1 = jnp.broadcast_to(o1, shape)
    t = target if target.shape == shape else jnp.broadcast_to(target, shape)

    n = math.prod(shape)
    if n == 0:
        return jnp.float32(jnp.nan)  # matches torch.mean of an empty tensor

    if n < min_pallas_elems:
        # Tiny inputs: dispatch + grid overhead dominates; plain XLA wins.
        return _mse_zsym_jnp(o0, o1, t, coef)

    is_v7 = _is_v7()
    ncs = 2 if is_v7 else 1                     # core split only where 2 TCs exist
    vmem_cap = (28 << 20) if is_v7 else (48 << 20)

    n_bulk = (n // LANE) * LANE                 # lane-aligned bulk for the kernel
    total = jnp.float32(0.0)

    if n_bulk > 0:
        # Contiguous reshape only: no pad, no upcast, no extra HBM copies.
        o0_2d = o0.reshape(-1)[:n_bulk].reshape(-1, LANE)
        o1_2d = o1.reshape(-1)[:n_bulk].reshape(-1, LANE)
        t_2d = t.reshape(-1)[:n_bulk].reshape(-1, LANE)

        rows = n_bulk // LANE
        in_itemsize = (o0_2d.dtype.itemsize + o1_2d.dtype.itemsize
                       + t_2d.dtype.itemsize)

        if block_rows is None:
            block_rows = 8192 if is_v7 else 4096

        # Max rows allowed by the generation's VMEM budget (double-buffered inputs
        # dominate; in-kernel temporaries are bounded by CHUNK streaming).
        slack = 2 << 20
        max_br_vmem = max(CHUNK,
                          ((vmem_cap - slack) // (2 * LANE * in_itemsize))
                          // CHUNK * CHUNK)
        br = min(_round_up(block_rows, CHUNK),
                 _round_up(pl.cdiv(rows, ncs), CHUNK),
                 max_br_vmem)
        br = max(br, CHUNK)

        num_blocks = pl.cdiv(rows, br)
        blocks_per_core = pl.cdiv(num_blocks, ncs)
        last_partial = (rows % br) != 0
        has_oob = (ncs * blocks_per_core) > num_blocks

        def in_map(ci, ji):
            # Clamp out-of-range blocks (their compute is skipped in-kernel).
            return (jnp.minimum(ci * blocks_per_core + ji, num_blocks - 1), 0)

        kernel = functools.partial(
            _mse_zsym_kernel, coef=float(coef), rows=rows, br=br, chunk=CHUNK,
            blocks_per_core=blocks_per_core, num_blocks=num_blocks,
            last_partial=last_partial, has_oob=has_oob)

        out_bytes = ncs * SUBLANE * LANE * 4
        vmem_need = 2 * br * LANE * in_itemsize + out_bytes + slack
        vmem_limit = int(vmem_cap) if vmem_need > (12 << 20) else None

        partials = pl.pallas_call(
            kernel,
            out_shape=jax.ShapeDtypeStruct((ncs, SUBLANE, LANE), jnp.float32),
            grid_spec=pltpu.PrefetchScalarGridSpec(
                num_scalar_prefetch=0,
                grid=(ncs, blocks_per_core),
                in_specs=[pl.BlockSpec((br, LANE), in_map) for _ in range(3)],
                out_specs=pl.BlockSpec((None, SUBLANE, LANE),
                                       lambda ci, ji: (ci, 0, 0)),
            ),
            compiler_params=pltpu.CompilerParams(
                dimension_semantics=("parallel", "arbitrary"),
                vmem_limit_bytes=vmem_limit,
            ),
            cost_estimate=pl.CostEstimate(
                flops=8 * n_bulk,
                transcendentals=0,
                bytes_accessed=n_bulk * in_itemsize + out_bytes,
            ),
        )(o0_2d, o1_2d, t_2d)

        total = total + jnp.sum(partials)

    if n_bulk < n:
        # Ragged (< 128 element) tail: negligible work, fold with plain jnp.
        t0 = o0.reshape(-1)[n_bulk:].astype(jnp.float32)
        t1 = o1.reshape(-1)[n_bulk:].astype(jnp.float32)
        tt = t.reshape(-1)[n_bulk:].astype(jnp.float32)
        dt = ((t0 + t1) * 0.5 - tt) ** 2 + jnp.float32(coef) * (t0 - t1) ** 2
        total = total + jnp.sum(dt)

    return total / jnp.float32(n)


def mse_loss_zsym_ref(output, target, coef=1.0):
    o0 = output[0].astype(jnp.float32)
    o1 = output[1].astype(jnp.float32)
    t = jnp.asarray(target).astype(jnp.float32)
    d = ((o0 + o1) * 0.5 - t) ** 2 + coef * (o0 - o1) ** 2
    return jnp.mean(d)


if __name__ == "__main__":
    key = jax.random.PRNGKey(0)
    k1, k2, k3, k4, k5, k6 = jax.random.split(key, 6)

    # Case 1: the module's typical small input (f32, lane-aligned flat size).
    out1 = jax.random.normal(k1, (2, 2, 4, 16, 16), dtype=jnp.float32)
    tgt1 = jax.random.normal(k2, (2, 4, 16, 16), dtype=jnp.float32)
    l1 = jax.block_until_ready(mse_loss_zsym(out1, tgt1, coef=1.0,
                                             min_pallas_elems=0))
    r1 = mse_loss_zsym_ref(out1, tgt1, coef=1.0)
    assert jnp.allclose(l1, r1, rtol=1e-5, atol=1e-6), (l1, r1)

    # Case 2: ragged flat size + broadcast target (masked last block + jnp tail).
    out2 = jax.random.normal(k3, (2, 3, 5, 7, 11), dtype=jnp.float32)
    tgt2 = jax.random.normal(k4, (5, 7, 11), dtype=jnp.float32)
    l2 = jax.block_until_ready(mse_loss_zsym(out2, tgt2, coef=0.5,
                                             min_pallas_elems=0))
    r2 = mse_loss_zsym_ref(out2, tgt2, coef=0.5)
    assert jnp.allclose(l2, r2, rtol=1e-5, atol=1e-6), (l2, r2)

    # Case 3: bf16 inputs, aligned larger shape (in-kernel upcast, fast path).
    out3 = jax.random.normal(k5, (2, 2, 8, 32, 64), dtype=jnp.bfloat16)
    tgt3 = jax.random.normal(k6, (2, 8, 32, 64), dtype=jnp.bfloat16)
    l3 = jax.block_until_ready(mse_loss_zsym(out3, tgt3, coef=2.0,
                                             min_pallas_elems=0))
    r3 = mse_loss_zsym_ref(out3, tgt3, coef=2.0)
    assert jnp.allclose(l3, r3, rtol=1e-4, atol=1e-5), (l3, r3)

    print("KERNEL_OK")
</pallas_src>

<mosaic_0001>
module attributes {stable_mosaic.version = 11 : i64} {
  func.func @_mse_zsym_kernel(%arg0: i32, %arg1: i32, %arg2: memref<64x128xf32, #tpu.memory_space<vmem>>, %arg3: memref<64x128xf32, #tpu.memory_space<vmem>>, %arg4: memref<64x128xf32, #tpu.memory_space<vmem>>, %arg5: memref<1x8x128xf32, #tpu.memory_space<vmem>>) attributes {dimension_semantics = [#tpu.dimension_semantics<parallel>, #tpu.dimension_semantics<arbitrary>], iteration_bounds = array<i64: 1, 1>, scalar_prefetch = 0 : i64, scratch_operands = 0 : i64, tpu.core_type = #tpu.core_type<tc>, window_params = [{transform_indices = @transform_0, window_bounds = array<i64: 64, 128>}, {transform_indices = @transform_1, window_bounds = array<i64: 64, 128>}, {transform_indices = @transform_2, window_bounds = array<i64: 64, 128>}, {transform_indices = @transform_3, window_bounds = array<i64: 1, 8, 128>}]} {
    %c0_i32 = arith.constant 0 : i32
    %0 = arith.cmpi eq, %arg1, %c0_i32 : i32
    %1 = arith.extui %0 : i1 to i32
    %c0_i32_0 = arith.constant 0 : i32
    %2 = arith.cmpi ne, %1, %c0_i32_0 : i32
    scf.if %2 {
      %cst = arith.constant 0.000000e+00 : f32
      %11 = vector.broadcast %cst : f32 to vector<8x128xf32>
      %c0 = arith.constant 0 : index
      %c0_5 = arith.constant 0 : index
      %c0_6 = arith.constant 0 : index
      %12 = vector.load %arg5[%c0, %c0_5, %c0_6] : memref<1x8x128xf32, #tpu.memory_space<vmem>>, vector<1x8x128xf32>
      %13 = vector.shape_cast %12 : vector<1x8x128xf32> to vector<8x128xf32>
      %14 = vector.shape_cast %11 : vector<8x128xf32> to vector<1x8x128xf32>
      tpu.vector_store %arg5[%c0, %c0_5, %c0_6], %14 {strides = array<i32>} : memref<1x8x128xf32, #tpu.memory_space<vmem>>, vector<1x8x128xf32>,
    } else {
    }
    %c1_i32 = arith.constant 1 : i32
    %3 = arith.muli %arg0, %c1_i32 : i32
    %4 = arith.addi %3, %arg1 : i32
    %c0_i32_1 = arith.constant 0 : i32
    %5 = arith.cmpi slt, %4, %c0_i32_1 : i32
    %6 = arith.extui %5 : i1 to i32
    %c0_i32_2 = arith.constant 0 : i32
    %7 = arith.cmpi ne, %6, %c0_i32_2 : i32
    scf.if %7 {
      %cst = arith.constant 0.000000e+00 : f32
      %11 = vector.broadcast %cst : f32 to vector<64x128xf32>
      %c0_i32_5 = arith.constant 0 : i32
      %c64_i32 = arith.constant 64 : i32
      %12 = arith.muli %c0_i32_5, %c64_i32 : i32
      %13 = tpu.assume_multiple %12, 64 : i32
      %14 = arith.index_cast %13 : i32 to index
      %c0 = arith.constant 0 : index
      %15 = vector.load %arg2[%14, %c0] : memref<64x128xf32, #tpu.memory_space<vmem>>, vector<64x128xf32>
      %16 = arith.index_cast %13 : i32 to index
      %c0_6 = arith.constant 0 : index
      %17 = vector.load %arg3[%16, %c0_6] : memref<64x128xf32, #tpu.memory_space<vmem>>, vector<64x128xf32>
      %18 = arith.index_cast %13 : i32 to index
      %c0_7 = arith.constant 0 : index
      %19 = vector.load %arg4[%18, %c0_7] : memref<64x128xf32, #tpu.memory_space<vmem>>, vector<64x128xf32>
      %20 = arith.addf %15, %17 : vector<64x128xf32>
      %cst_8 = arith.constant 5.000000e-01 : f32
      %21 = vector.broadcast %cst_8 : f32 to vector<64x128xf32>
      %22 = arith.mulf %20, %21 : vector<64x128xf32>
      %23 = arith.subf %22, %19 : vector<64x128xf32>
      %24 = arith.subf %15, %17 : vector<64x128xf32>
      %25 = arith.mulf %23, %23 : vector<64x128xf32>
      %26 = arith.mulf %24, %24 : vector<64x128xf32>
      %cst_9 = arith.constant 1.000000e+00 : f32
      %27 = vector.broadcast %cst_9 : f32 to vector<64x128xf32>
      %28 = arith.mulf %27, %26 : vector<64x128xf32>
      %29 = arith.addf %25, %28 : vector<64x128xf32>
      %30 = arith.addf %11, %29 : vector<64x128xf32>
      %c1_i32_10 = arith.constant 1 : i32
      %c0_11 = arith.constant 0 : index
      %c0_12 = arith.constant 0 : index
      %c0_13 = arith.constant 0 : index
      %31 = vector.load %arg5[%c0_11, %c0_12, %c0_13] : memref<1x8x128xf32, #tpu.memory_space<vmem>>, vector<1x8x128xf32>
      %32 = vector.shape_cast %31 : vector<1x8x128xf32> to vector<8x128xf32>
      %33 = vector.shape_cast %30 : vector<64x128xf32> to vector<8x8x128xf32>
      %cst_14 = arith.constant dense<0.000000e+00> : vector<8x128xf32>
      %34 = vector.multi_reduction <add>, %33, %cst_14 [0] : vector<8x8x128xf32> to vector<8x128xf32>
      %35 = arith.addf %32, %34 : vector<8x128xf32>
      %c0_15 = arith.constant 0 : index
      %c0_16 = arith.constant 0 : index
      %c0_17 = arith.constant 0 : index
      %36 = vector.load %arg5[%c0_15, %c0_16, %c0_17] : memref<1x8x128xf32, #tpu.memory_space<vmem>>, vector<1x8x128xf32>
      %37 = vector.shape_cast %36 : vector<1x8x128xf32> to vector<8x128xf32>
      %38 = vector.shape_cast %35 : vector<8x128xf32> to vector<1x8x128xf32>
      tpu.vector_store %arg5[%c0_15, %c0_16, %c0_17], %38 {strides = array<i32>} : memref<1x8x128xf32, #tpu.memory_space<vmem>>, vector<1x8x128xf32>,
    } else {
    }
    %c0_i32_3 = arith.constant 0 : i32
    %8 = arith.cmpi eq, %4, %c0_i32_3 : i32
    %9 = arith.extui %8 : i1 to i32
    %c0_i32_4 = arith.constant 0 : i32
    %10 = arith.cmpi ne, %9, %c0_i32_4 : i32
    scf.if %10 {
      %cst = arith.constant 0.000000e+00 : f32
      %11 = vector.broadcast %cst : f32 to vector<64x128xf32>
      %c0_i32_5 = arith.constant 0 : i32
      %c64_i32 = arith.constant 64 : i32
      %12 = arith.muli %c0_i32_5, %c64_i32 : i32
      %13 = tpu.assume_multiple %12, 64 : i32
      %14 = arith.index_cast %13 : i32 to index
      %c0 = arith.constant 0 : index
      %15 = vector.load %arg2[%14, %c0] : memref<64x128xf32, #tpu.memory_space<vmem>>, vector<64x128xf32>
      %16 = arith.index_cast %13 : i32 to index
      %c0_6 = arith.constant 0 : index
      %17 = vector.load %arg3[%16, %c0_6] : memref<64x128xf32, #tpu.memory_space<vmem>>, vector<64x128xf32>
      %18 = arith.index_cast %13 : i32 to index
      %c0_7 = arith.constant 0 : index
      %19 = vector.load %arg4[%18, %c0_7] : memref<64x128xf32, #tpu.memory_space<vmem>>, vector<64x128xf32>
      %20 = arith.addf %15, %17 : vector<64x128xf32>
      %cst_8 = arith.constant 5.000000e-01 : f32
      %21 = vector.broadcast %cst_8 : f32 to vector<64x128xf32>
      %22 = arith.mulf %20, %21 : vector<64x128xf32>
      %23 = arith.subf %22, %19 : vector<64x128xf32>
      %24 = arith.subf %15, %17 : vector<64x128xf32>
      %25 = arith.mulf %23, %23 : vector<64x128xf32>
      %26 = arith.mulf %24, %24 : vector<64x128xf32>
      %cst_9 = arith.constant 1.000000e+00 : f32
      %27 = vector.broadcast %cst_9 : f32 to vector<64x128xf32>
      %28 = arith.mulf %27, %26 : vector<64x128xf32>
      %29 = arith.addf %25, %28 : vector<64x128xf32>
      %c64_i32_10 = arith.constant 64 : i32
      %30 = arith.muli %4, %c64_i32_10 : i32
      %31 = arith.addi %30, %13 : i32
      %32 = tpu.iota {dimensions = array<i32: 0>} : vector<64x1xi32>
      %33 = vector.broadcast %31 : i32 to vector<64x1xi32>
      %34 = arith.addi %33, %32 : vector<64x1xi32>
      %c16_i32 = arith.constant 16 : i32
      %35 = vector.broadcast %c16_i32 : i32 to vector<64x1xi32>
      %36 = arith.cmpi slt, %34, %35 : vector<64x1xi32>
      %cst_11 = arith.constant 0.000000e+00 : f32
      %37 = vector.shape_cast %36 : vector<64x1xi1> to vector<64x1xi1>
      %38 = vector.broadcast %37 : vector<64x1xi1> to vector<64x128xi1>
      %39 = vector.broadcast %cst_11 : f32 to vector<64x128xf32>
      %40 = arith.select %38, %29, %39 : vector<64x128xi1>, vector<64x128xf32>
      %41 = arith.addf %11, %40 : vector<64x128xf32>
      %c1_i32_12 = arith.constant 1 : i32
      %c0_13 = arith.constant 0 : index
      %c0_14 = arith.constant 0 : index
      %c0_15 = arith.constant 0 : index
      %42 = vector.load %arg5[%c0_13, %c0_14, %c0_15] : memref<1x8x128xf32, #tpu.memory_space<vmem>>, vector<1x8x128xf32>
      %43 = vector.shape_cast %42 : vector<1x8x128xf32> to vector<8x128xf32>
      %44 = vector.shape_cast %41 : vector<64x128xf32> to vector<8x8x128xf32>
      %cst_16 = arith.constant dense<0.000000e+00> : vector<8x128xf32>
      %45 = vector.multi_reduction <add>, %44, %cst_16 [0] : vector<8x8x128xf32> to vector<8x128xf32>
      %46 = arith.addf %43, %45 : vector<8x128xf32>
      %c0_17 = arith.constant 0 : index
      %c0_18 = arith.constant 0 : index
      %c0_19 = arith.constant 0 : index
      %47 = vector.load %arg5[%c0_17, %c0_18, %c0_19] : memref<1x8x128xf32, #tpu.memory_space<vmem>>, vector<1x8x128xf32>
      %48 = vector.shape_cast %47 : vector<1x8x128xf32> to vector<8x128xf32>
      %49 = vector.shape_cast %46 : vector<8x128xf32> to vector<1x8x128xf32>
      tpu.vector_store %arg5[%c0_17, %c0_18, %c0_19], %49 {strides = array<i32>} : memref<1x8x128xf32, #tpu.memory_space<vmem>>, vector<1x8x128xf32>,
    } else {
    }
    return
  }
  func.func @transform_0(%arg0: i32, %arg1: i32) -> (i32, i32) {
    %c1_i32 = arith.constant 1 : i32
    %0 = arith.muli %arg0, %c1_i32 : i32
    %1 = arith.addi %0, %arg1 : i32
    %c0_i32 = arith.constant 0 : i32
    %2 = arith.minsi %1, %c0_i32 : i32
    %c0_i32_0 = arith.constant 0 : i32
    %c0_i32_1 = arith.constant 0 : i32
    return %2, %c0_i32_0 : i32, i32
  }
  func.func @transform_1(%arg0: i32, %arg1: i32) -> (i32, i32) {
    %c1_i32 = arith.constant 1 : i32
    %0 = arith.muli %arg0, %c1_i32 : i32
    %1 = arith.addi %0, %arg1 : i32
    %c0_i32 = arith.constant 0 : i32
    %2 = arith.minsi %1, %c0_i32 : i32
    %c0_i32_0 = arith.constant 0 : i32
    %c0_i32_1 = arith.constant 0 : i32
    return %2, %c0_i32_0 : i32, i32
  }
  func.func @transform_2(%arg0: i32, %arg1: i32) -> (i32, i32) {
    %c1_i32 = arith.constant 1 : i32
    %0 = arith.muli %arg0, %c1_i32 : i32
    %1 = arith.addi %0, %arg1 : i32
    %c0_i32 = arith.constant 0 : i32
    %2 = arith.minsi %1, %c0_i32 : i32
    %c0_i32_0 = arith.constant 0 : i32
    %c0_i32_1 = arith.constant 0 : i32
    return %2, %c0_i32_0 : i32, i32
  }
  func.func @transform_3(%arg0: i32, %arg1: i32) -> (i32, i32, i32) {
    %c0_i32 = arith.constant 0 : i32
    %c0_i32_0 = arith.constant 0 : i32
    %c0_i32_1 = arith.constant 0 : i32
    return %arg0, %c0_i32, %c0_i32_0 : i32, i32, i32
  }
}

</mosaic_0001>

<bundles_post_ra>
// kernel: tpu_custom_call.1
= control target key start
LH: loop header
LB: loop body
LE: loop exit
PB: predicated region body
PF: predicated region fallthrough
CT: control target
= control target key end

     0   :  { %8 = vsyncpa [#allocation3], 0  ;;  %s528_s0 = inlined_call_operand.hbm [shape: f32[16,128], index: 0, kind: input, shape index: {}]   ;;  %s529_s1 = inlined_call_operand.hbm [shape: f32[16,128], index: 1, kind: input, shape index: {}]   ;;  %s530_s2 = inlined_call_operand.hbm [shape: f32[16,128], index: 2, kind: input, shape index: {}]   ;;  %s531_s3 = inlined_call_operand.hbm [shape: f32[1,8,128], index: 3, kind: output, shape index: {}]  }
   0x1   :  { %9 = vsyncpa [#allocation6], 0 }
   0x2   :  { %10 = vsyncpa [#allocation4], 0 }
   0x3   :  { %21 = vsyncadd [#allocation3], 768  ;;  %s481_s12 = smov [#allocation2]  }
   0x4   :  { %s26_s13 = sshll.u32 %s481_s12, 4  ;;  %s27_s13 = int_to_ptr.vmem [resolvable:$true] %s26_s13 }
   0x5   :  { %s403_s14 = scalar_lea.vmem %s27_s13, 256  ;;  %s407_s15 = scalar_lea.vmem %s27_s13, 1024 }
   0x6   :  { %p404_p0 = scmp.ne.s32.totalorder %s27_s13, %s403_s14  ;;  %p408_p1 = scmp.lt.s32.totalorder %s27_s13, %s27_s13 }
   0x7   :  { %p409_p2 = scmp.lt.s32.totalorder %s407_s15, %s403_s14 }
   0x9   :  { %p410_p3 = por %p409_p2, %p408_p1 }
   0xb   :  { %p411_p4 = pnand %p410_p3, %p404_p0 }
   0xd   :  { %414 = shalt.err (!%p411_p4)
}
   0xe   :  { %s482_s16 = smov 128   ;;  %s483_s17 = smov 8  }
   0xf   :  { %32 = dma.hbm_to_vmem [thread:$0]  %s528_s0, 256, %s27_s13, [#allocation3], %s482_s16, %s482_s16, %s483_s17  }
  0x10   :  { %43 = vsyncadd [#allocation6], 768  ;;  %s484_s20 = smov [#allocation5]  }
  0x11   :  { %s48_s21 = sshll.u32 %s484_s20, 4  ;;  %s49_s21 = int_to_ptr.vmem [resolvable:$true] %s48_s21 }
  0x12   :  { %s423_s22 = scalar_lea.vmem %s49_s21, 256  ;;  %s427_s23 = scalar_lea.vmem %s49_s21, 1024 }
  0x13   :  { %p424_p5 = scmp.ne.s32.totalorder %s49_s21, %s423_s22  ;;  %p428_p6 = scmp.lt.s32.totalorder %s49_s21, %s49_s21 }
  0x14   :  { %p429_p7 = scmp.lt.s32.totalorder %s427_s23, %s423_s22 }
  0x16   :  { %p430_p8 = por %p429_p7, %p428_p6 }
  0x18   :  { %p431_p9 = pnand %p430_p8, %p424_p5 }
  0x1a   :  { %434 = shalt.err (!%p431_p9)
}
  0x1b   :  { %54 = dma.hbm_to_vmem [thread:$0]  %s529_s1, 256, %s49_s21, [#allocation6], %s482_s16, %s482_s16, %s483_s17  }
  0x1c   :  { %65 = vsyncadd [#allocation6], 768  ;;  %s485_s0 = smov [#allocation7]  }
  0x1d   :  { %s70_s26 = sshll.u32 %s485_s0, 4  ;;  %s71_s26 = int_to_ptr.vmem [resolvable:$true] %s70_s26 }
  0x1e   :  { %s443_s27 = scalar_lea.vmem %s71_s26, 256  ;;  %s447_s28 = scalar_lea.vmem %s71_s26, 1024 }
  0x1f   :  { %p444_p10 = scmp.ne.s32.totalorder %s71_s26, %s443_s27  ;;  %p448_p11 = scmp.lt.s32.totalorder %s71_s26, %s71_s26 }
  0x20   :  { %p449_p12 = scmp.lt.s32.totalorder %s447_s28, %s443_s27 }
  0x22   :  { %p450_p13 = por %p449_p12, %p448_p11 }
  0x24   :  { %p451_p0 = pnand %p450_p13, %p444_p10 }
  0x26   :  { %454 = shalt.err (!%p451_p0)
}
  0x27   :  { %76 = dma.hbm_to_vmem [thread:$0]  %s530_s2, 256, %s71_s26, [#allocation6], %s482_s16, %s482_s16, %s483_s17  }
  0x28   :  { %475 = dma.done.wait [#allocation3], 1024  }
  0x29   :  { %476 = vsyncadd [#allocation3], 4294966272 }
  0x2a   :  { %477 = dma.done.wait [#allocation6], 2048  }
  0x2b   :  { %478 = vsyncadd [#allocation6], 4294965248  ;;  %v216_v0 = vld [vmem:[#allocation2] sm:$0xff]  ;;  %v217_v1 = vld [vmem:[#allocation2 + $0x8] sm:$0xff]  ;;  %s486_s1 = smov [#allocation8]  }
  0x2c   :  { %v224_v2 = vld [vmem:[#allocation5] sm:$0xff]  ;;  %v225_v3 = vld [vmem:[#allocation5 + $0x8] sm:$0xff]  ;;  %s372_s2 = sshll.u32 %s486_s1, 4  ;;  %s373_s2 = int_to_ptr.vmem [resolvable:$true] %s372_s2 }
  0x2d   :  { %v240_v4 = vadd.f32 %v224_v2, %v216_v0  ;;  %v264_v5 = vsub.f32 %v216_v0, %v224_v2  ;;  %v232_v6 = vld [vmem:[#allocation7] sm:$0xff]  ;;  %v241_v7 = vadd.f32 %v225_v3, %v217_v1  ;;  %v265_v8 = vsub.f32 %v217_v1, %v225_v3  ;;  %v233_v9 = vld [vmem:[#allocation7 + $0x8] sm:$0xff]  ;;  %s455_s4 = scalar_lea.vmem %s373_s2, 128  ;;  %p460_p2 = scmp.lt.s32.totalorder %s373_s2, %s373_s2 }
  0x2e   :  { %p456_p1 = scmp.ne.s32.totalorder %s373_s2, %s455_s4  ;;  %p461_p3 = scmp.lt.s32.totalorder %s455_s4, %s455_s4 }
  0x2f   :  { %v248_v10 = vmul.f32 0.5, %v240_v4  ;;  %v249_v11 = vmul.f32 0.5, %v241_v7  ;;  %v280_v13 = vmul.f32 %v264_v5, %v264_v5  ;;  %v281_v15 = vmul.f32 %v265_v8, %v265_v8 }
  0x30   :  { %p462_p4 = por %p461_p3, %p460_p2 }
  0x31   :  { %v256_v12 = vsub.f32 %v248_v10, %v232_v6  ;;  %v257_v14 = vsub.f32 %v249_v11, %v233_v9 }
  0x32   :  { %p463_p5 = pnand %p462_p4, %p456_p1 }
  0x33   :  { %v272_v16 = vmul.f32 %v256_v12, %v256_v12  ;;  %v273_v17 = vmul.f32 %v257_v14, %v257_v14 }
  0x35   :  { %v288_v18 = vadd.f32 %v280_v13, %v272_v16  ;;  %v289_v19 = vadd.f32 %v281_v15, %v273_v17 }
  0x37   :  { %v357_v20 = vadd.f32 %v289_v19, %v288_v18 }
  0x39   :  { %365 = vst [vmem:[#allocation8] sm:$0xff] %v357_v20 }
  0x3a   :  { %466 = shalt.err (!%p463_p5)
}
  0x3b   :  { %375 = dma.vmem_to_hbm [thread:$0]  %s373_s2, 128, %s531_s3, [#allocation4]  }
  0x3c   :  { %479 = dma.done.wait [#allocation4], 128  }
  0x3d   :  { %480 = vsyncadd [#allocation4], 4294967168 }
  0x3e   :  { %379 = vsyncpa [#allocation3], 1 }
  0x3f   :  { %380 = vsyncpa [#allocation6], 1 }
  0x40   :  { %381 = vsyncpa [#allocation4], 1 }

</bundles_post_ra>
